<compile_context>
chip_gen: v5e
topology: v5e:2x2
jax: 0.10.0
libtpu: 0.0.40
codegen_flags: <defaults>
</compile_context>

<pallas_src>
import functools

import jax
import jax.numpy as jnp
from jax.experimental import pallas as pl
from jax.experimental.pallas import tpu as pltpu


# ----------------------------------------------------------------------------
# Synthetic deterministic "genome" (the module's __init__ only stores it).
# Decoded functions all share the signature
#   f(input1, input2, constant, constant_2, row_fixed, column_fixed)
# ----------------------------------------------------------------------------
def _op_add(a, b, c, c2, rf, cf):
    return a + b


def _op_sub(a, b, c, c2, rf, cf):
    return a - b


def _op_mul(a, b, c, c2, rf, cf):
    return a * b


def _op_scale_shift(a, b, c, c2, rf, cf):
    return a * c + c2


def _op_abs(a, b, c, c2, rf, cf):
    return jnp.abs(a)


def _op_mean(a, b, c, c2, rf, cf):
    return jnp.mean(a)


class FunctionDecoder:
    decoding_map = {
        0: (_op_add,),
        1: (_op_sub,),
        2: (_op_mul,),
        3: (_op_scale_shift,),
        4: (_op_abs,),
        5: (_op_mean,),
    }


class Genome:
    """Deterministic synthetic genome: loss = mean(0.5 * (o - t)^2 + 0.1)."""

    def __init__(self):
        self.function_decoder = FunctionDecoder()
        self.memory_size = 8
        self.input_addresses = [0, 1]          # slots for outputs, targets
        self.output_addresses = [6]            # slot holding the final loss
        # program: diff -> square -> affine scale -> mean
        self.gene          = [1, 2, 3, 5]
        self.input_gene    = [0, 2, 3, 4]
        self.input_gene_2  = [1, 2, 3, 4]
        self.output_gene   = [2, 3, 4, 6]
        self.constants_gene   = [0.0, 0.0, 0.5, 0.0]
        self.constants_gene_2 = [0.0, 0.0, 0.1, 0.0]
        self.row_fixed = 16
        self.column_fixed = 128


# ----------------------------------------------------------------------------
# Pallas kernel: unrolls the genome interpreter over one (tm, 128) row tile,
# accumulating the cross-tile sum for the final mean into a VMEM scratch.
# ----------------------------------------------------------------------------
def _evolved_loss_kernel(genome, total_rows, tm, needs_mask,
                         out_ref, tgt_ref, loss_ref, acc_ref):
    pid = pl.program_id(0)
    last = pl.num_programs(0) - 1

    @pl.when(pid == 0)
    def _():
        acc_ref[...] = jnp.zeros_like(acc_ref)

    # Valid-element mask for the (possibly ragged) last tile.  Static flag:
    # the steady-state loop is unmasked when rows % tm == 0.
    if needs_mask:
        gidx = pid * tm + jax.lax.broadcasted_iota(jnp.int32, (tm, 128), 0)
        valid = gidx < total_rows
    else:
        valid = None

    def _masked(x):
        return x if valid is None else jnp.where(valid, x, 0.0)

    # --- genome interpreter, unrolled at trace time over this tile ----------
    # memory.reset(): unwritten slots read as zeros, but never materialize
    # zero tiles for slots that are never touched.
    memory = [None] * genome.memory_size
    memory[genome.input_addresses[0]] = out_ref[...].astype(jnp.float32)
    memory[genome.input_addresses[1]] = tgt_ref[...].astype(jnp.float32)

    def read_slot(idx):
        v = memory[idx]
        if v is None:
            v = jnp.zeros((tm, 128), jnp.float32)
            memory[idx] = v
        return v

    out_addr = genome.output_addresses[0]
    n_genes = len(genome.gene)
    final_mean_handled = False

    for i, op in enumerate(genome.gene):
        func = genome.function_decoder.decoding_map[op][0]
        input1 = read_slot(genome.input_gene[i])
        input2 = read_slot(genome.input_gene_2[i])
        constant = jnp.float32(genome.constants_gene[i])
        constant_2 = jnp.float32(genome.constants_gene_2[i])
        # TODO(synk): requires_grad on constants (autograd) has no forward-pass
        # effect; constants are plain trace-time scalars here.

        is_final_mean = (func is _op_mean
                         and i == n_genes - 1
                         and genome.output_gene[i] == out_addr)
        if func is _op_mean and not is_final_mean:
            # TODO(synk): a mean followed by further genome ops needs a
            # two-pass (cross-tile) treatment; not expressible in this
            # single-pass tiling.
            raise NotImplementedError(
                "mean op only supported as the final, loss-producing gene")

        if is_final_mean:
            # Cross-tile mean: per-tile partial sum into VMEM scratch; the
            # scalar collapse + divide is deferred to the epilogue.
            acc_ref[...] += jnp.sum(_masked(input1), axis=0, keepdims=True)
            final_mean_handled = True
        else:
            output = func(input1, input2, constant, constant_2,
                          genome.row_fixed, genome.column_fixed)
            if output is not None:
                memory[genome.output_gene[i]] = output

    if not final_mean_handled:
        # TODO(synk): the PyTorch module would return the full tensor stored in
        # the output slot; the scalar-output contract reduces it to its mean
        # (cross-tile correct) instead.
        acc_ref[...] += jnp.sum(_masked(read_slot(out_addr)),
                                axis=0, keepdims=True)

    @pl.when(pid == last)
    def _():
        total = jnp.sum(acc_ref[...])
        loss_ref[0, 0] = total / jnp.float32(total_rows * 128)


# ----------------------------------------------------------------------------
# Wrapper: NCHW -> lane-dense (rows, 128) view (native dtype, no extra copy),
# 1-D grid of row tiles with accumulator + epilogue.
# ----------------------------------------------------------------------------
_TM_TARGET = 2048  # rows/tile: 2048*128*4B = 1 MiB f32 (0.5 MiB bf16) per input


def evolved_loss(outputs, targets, genome, tm=_TM_TARGET):
    n = outputs.size
    assert n % 128 == 0, "total element count must be a multiple of 128 lanes"
    assert targets.size == n
    rows = n // 128
    # Free layout-preserving view; keep native dtype (cast happens in-kernel).
    o2 = outputs.reshape(rows, 128)
    t2 = targets.reshape(rows, 128)

    if rows <= tm:
        tm = rows                  # tiny input: single full-array block, no grid overhead
    else:
        assert tm % 8 == 0, "tile rows must satisfy the (8, 128) constraint"
    grid = (pl.cdiv(rows, tm),)
    needs_mask = (rows % tm) != 0  # mask only the ragged last tile

    kernel = functools.partial(_evolved_loss_kernel, genome, rows, tm, needs_mask)
    loss = pl.pallas_call(
        kernel,
        out_shape=jax.ShapeDtypeStruct((1, 1), jnp.float32),
        grid=grid,
        in_specs=[
            pl.BlockSpec((tm, 128), lambda i: (i, 0)),
            pl.BlockSpec((tm, 128), lambda i: (i, 0)),
        ],
        out_specs=pl.BlockSpec((1, 1), lambda i: (0, 0), memory_space=pltpu.SMEM),
        scratch_shapes=[pltpu.VMEM((1, 128), jnp.float32)],
        compiler_params=pltpu.CompilerParams(
            # Cross-tile accumulation => the grid axis is a reduction axis.
            dimension_semantics=("arbitrary",),
        ),
    )(o2, t2)
    return loss[0, 0]


if __name__ == "__main__":
    genome = Genome()
    key = jax.random.PRNGKey(0)
    k1, k2, k3, k4 = jax.random.split(key, 4)

    # Test 1: NCHW like the PyTorch conventions (batch=2, channels=4, 16x16).
    outputs = jax.random.normal(k1, (2, 4, 16, 16), dtype=jnp.float32)
    targets = jax.random.normal(k2, (2, 4, 16, 16), dtype=jnp.float32)
    loss_fn = jax.jit(lambda o, t: evolved_loss(o, t, genome))
    loss = jax.block_until_ready(loss_fn(outputs, targets))
    expected = 0.5 * jnp.mean((outputs - targets) ** 2) + 0.1
    assert jnp.allclose(loss, expected, rtol=1e-5, atol=1e-5), (loss, expected)

    # Test 2: exercise the multi-tile grid + ragged-last-tile mask path
    # (rows=256, tm=40 -> grid of 7 tiles, last tile partially valid).
    outputs2 = jax.random.normal(k3, (4, 8, 32, 32), dtype=jnp.float32)
    targets2 = jax.random.normal(k4, (4, 8, 32, 32), dtype=jnp.float32)
    loss_fn2 = jax.jit(lambda o, t: evolved_loss(o, t, genome, tm=40))
    loss2 = jax.block_until_ready(loss_fn2(outputs2, targets2))
    expected2 = 0.5 * jnp.mean((outputs2 - targets2) ** 2) + 0.1
    assert jnp.allclose(loss2, expected2, rtol=1e-5, atol=1e-5), (loss2, expected2)

    print("KERNEL_OK")
</pallas_src>

<mosaic_0001>
module attributes {stable_mosaic.version = 11 : i64} {
  func.func @_evolved_loss_kernel(%arg0: i32, %arg1: memref<16x128xf32, #tpu.memory_space<vmem>>, %arg2: memref<16x128xf32, #tpu.memory_space<vmem>>, %arg3: memref<1x1xf32, #tpu.memory_space<smem>>, %arg4: memref<1x128xf32, #tpu.memory_space<vmem>>) attributes {dimension_semantics = [#tpu.dimension_semantics<arbitrary>], iteration_bounds = array<i64: 1>, scalar_prefetch = 0 : i64, scratch_operands = 1 : i64, tpu.core_type = #tpu.core_type<tc>, window_params = [{transform_indices = @transform_0, window_bounds = array<i64: 16, 128>}, {transform_indices = @transform_1, window_bounds = array<i64: 16, 128>}, {transform_indices = @transform_2, window_bounds = array<i64: 1, 1>}]} {
    %c0_i32 = arith.constant 0 : i32
    %0 = arith.cmpi eq, %arg0, %c0_i32 : i32
    %1 = arith.extui %0 : i1 to i32
    %c0_i32_0 = arith.constant 0 : i32
    %2 = arith.cmpi ne, %1, %c0_i32_0 : i32
    scf.if %2 {
      %cst_12 = arith.constant 0.000000e+00 : f32
      %19 = vector.broadcast %cst_12 : f32 to vector<1x128xf32>
      %c0_13 = arith.constant 0 : index
      %c0_14 = arith.constant 0 : index
      %20 = vector.load %arg4[%c0_13, %c0_14] : memref<1x128xf32, #tpu.memory_space<vmem>>, vector<1x128xf32>
      tpu.vector_store %arg4[%c0_13, %c0_14], %19 {strides = array<i32>} : memref<1x128xf32, #tpu.memory_space<vmem>>, vector<1x128xf32>,
    } else {
    }
    %c0 = arith.constant 0 : index
    %c0_1 = arith.constant 0 : index
    %3 = vector.load %arg1[%c0, %c0_1] : memref<16x128xf32, #tpu.memory_space<vmem>>, vector<16x128xf32>
    %c0_2 = arith.constant 0 : index
    %c0_3 = arith.constant 0 : index
    %4 = vector.load %arg2[%c0_2, %c0_3] : memref<16x128xf32, #tpu.memory_space<vmem>>, vector<16x128xf32>
    %5 = arith.subf %3, %4 : vector<16x128xf32>
    %6 = arith.mulf %5, %5 : vector<16x128xf32>
    %cst = arith.constant 5.000000e-01 : f32
    %7 = vector.broadcast %cst : f32 to vector<16x128xf32>
    %8 = arith.mulf %6, %7 : vector<16x128xf32>
    %cst_4 = arith.constant 1.000000e-01 : f32
    %9 = vector.broadcast %cst_4 : f32 to vector<16x128xf32>
    %10 = arith.addf %8, %9 : vector<16x128xf32>
    %c0_5 = arith.constant 0 : index
    %c0_6 = arith.constant 0 : index
    %11 = vector.load %arg4[%c0_5, %c0_6] : memref<1x128xf32, #tpu.memory_space<vmem>>, vector<1x128xf32>
    %cst_7 = arith.constant dense<0.000000e+00> : vector<128xf32>
    %12 = vector.multi_reduction <add>, %10, %cst_7 [0] : vector<16x128xf32> to vector<128xf32>
    %13 = vector.shape_cast %12 : vector<128xf32> to vector<1x128xf32>
    %14 = arith.addf %11, %13 : vector<1x128xf32>
    %c0_8 = arith.constant 0 : index
    %c0_9 = arith.constant 0 : index
    %15 = vector.load %arg4[%c0_8, %c0_9] : memref<1x128xf32, #tpu.memory_space<vmem>>, vector<1x128xf32>
    tpu.vector_store %arg4[%c0_8, %c0_9], %14 {strides = array<i32>} : memref<1x128xf32, #tpu.memory_space<vmem>>, vector<1x128xf32>,
    %c0_i32_10 = arith.constant 0 : i32
    %16 = arith.cmpi eq, %arg0, %c0_i32_10 : i32
    %17 = arith.extui %16 : i1 to i32
    %c0_i32_11 = arith.constant 0 : i32
    %18 = arith.cmpi ne, %17, %c0_i32_11 : i32
    scf.if %18 {
      %c0_12 = arith.constant 0 : index
      %c0_13 = arith.constant 0 : index
      %19 = vector.load %arg4[%c0_12, %c0_13] : memref<1x128xf32, #tpu.memory_space<vmem>>, vector<1x128xf32>
      %20 = vector.shape_cast %19 : vector<1x128xf32> to vector<1x1x128xf32>
      %cst_14 = arith.constant dense<0.000000e+00> : vector<1xf32>
      %21 = vector.multi_reduction <add>, %20, %cst_14 [1, 2] : vector<1x1x128xf32> to vector<1xf32>
      %22 = vector.shape_cast %21 : vector<1xf32> to vector<1x1x1xf32>
      %23 = vector.extract %22[0, 0, 0] : f32 from vector<1x1x1xf32>
      %cst_15 = arith.constant 2.048000e+03 : f32
      %24 = arith.divf %23, %cst_15 : f32
      %c0_16 = arith.constant 0 : index
      %c0_17 = arith.constant 0 : index
      %25 = memref.load %arg3[%c0_16, %c0_17] : memref<1x1xf32, #tpu.memory_space<smem>>
      memref.store %24, %arg3[%c0_16, %c0_17] : memref<1x1xf32, #tpu.memory_space<smem>>
    } else {
    }
    return
  }
  func.func @transform_0(%arg0: i32) -> (i32, i32) {
    %c0_i32 = arith.constant 0 : i32
    %c0_i32_0 = arith.constant 0 : i32
    return %arg0, %c0_i32 : i32, i32
  }
  func.func @transform_1(%arg0: i32) -> (i32, i32) {
    %c0_i32 = arith.constant 0 : i32
    %c0_i32_0 = arith.constant 0 : i32
    return %arg0, %c0_i32 : i32, i32
  }
  func.func @transform_2(%arg0: i32) -> (i32, i32) {
    %c0_i32 = arith.constant 0 : i32
    %c0_i32_0 = arith.constant 0 : i32
    %c0_i32_1 = arith.constant 0 : i32
    return %c0_i32, %c0_i32_0 : i32, i32
  }
}

</mosaic_0001>

<bundles_post_ra>
// kernel: _lambda_.1
= control target key start
LH: loop header
LB: loop body
LE: loop exit
PB: predicated region body
PF: predicated region fallthrough
CT: control target
= control target key end

     0   :  { %v103_v3 = vmov 0.0   ;;  %s136_s0 = inlined_call_operand.vmem [shape: f32[16,128], index: 0, kind: input, shape index: {}]   ;;  %s137_s1 = inlined_call_operand.vmem [shape: f32[16,128], index: 1, kind: input, shape index: {}]   ;;  %s138_s2 = inlined_call_operand.hbm [shape: f32[1,1], index: 2, kind: output, shape index: {}]  }
   0x1   :  { %v17_v0 = vld [vmem:[%s136_s0] sm:$0xff]  ;;  %v18_v1 = vld [vmem:[%s136_s0 + $0x8] sm:$0xff]  ;;  %16 = vst [vmem:[#allocation2] sm:$0x1] %v103_v3 }
   0x2   :  { %v19_v2 = vld [vmem:[%s137_s1] sm:$0xff]  ;;  %v20_v4 = vld [vmem:[%s137_s1 + $0x8] sm:$0xff] }
   0x3   :  { %v21_v5 = vsub.f32 %v17_v0, %v19_v2 }
   0x4   :  { %7 = vsyncpa [#allocation4], 0  ;;  %v22_v6 = vsub.f32 %v18_v1, %v20_v4  ;;  %vm43_vm0 = vcmask 1040384   ;;  %v104_v24 = vmov 2048.0   ;;  %s70_s17 = sshll.u32 %s138_s2, 4  ;;  %s105_s21 = smov [#allocation3]   ;;  %s71_s17 = int_to_ptr.hbm [resolvable:$true] %s70_s17 }
   0x5   :  { %v23_v7 = vmul.f32 %v21_v5, %v21_v5  ;;  %87 = vrcp.f32 %v104_v24 }
   0x6   :  { %v24_v8 = vmul.f32 %v22_v6, %v22_v6 }
   0x7   :  { %v25_v9 = vmul.f32 0.5, %v23_v7 }
   0x8   :  { %v26_v10 = vmul.f32 0.5, %v24_v8  ;;  %v29_v19 = vld [vmem:[#allocation2] sm:$0x1] }
   0x9   :  { %v27_v11 = vadd.f32 0.1, %v25_v9 }
   0xa   :  { %v28_v12 = vadd.f32 0.1, %v26_v10 }
   0xb   :  { %v88_v25 = vpop.eup %87 }
   0xc   :  { %v30_v13 = vadd.f32 %v28_v12, %v27_v11  ;;  %v55_v26 = vmul.f32 2048.0, %v88_v25  ;;  %vm59_vm1 = vweird.f32 %v88_v25 }
   0xe   :  { %v31_v14 = vrot.slane %v30_v13, 4  ;;  %v56_v27 = vsub.f32 1.0, %v55_v26 }
  0x10   :  { %v32_v15 = vadd.f32 %v31_v14, %v30_v13  ;;  %v57_v31 = vmul.f32 %v88_v25, %v56_v27 }
  0x12   :  { %v33_v16 = vrot.slane %v32_v15, 2  ;;  %v58_v34 = vadd.f32 %v88_v25, %v57_v31 }
  0x14   :  { %v34_v17 = vadd.f32 %v33_v16, %v32_v15  ;;  %v60_v37 = vsel %vm59_vm1, %v88_v25, %v58_v34 }
  0x16   :  { %v35_v18 = vrot.slane %v34_v17, 1 }
  0x18   :  { %v36_v20 = vadd.f32 %v35_v18, %v34_v17 }
  0x1a   :  { %v37_v21 = vadd.f32 %v36_v20, %v29_v19 }
  0x1c   :  { %38 = vst [vmem:[#allocation2] sm:$0x1] %v37_v21 }
  0x23   :  { %v42_v22 = vld [vmem:[#allocation2] sm:$0x1] }
  0x24   :  { %v44_v23 = vsel %vm43_vm0, %v42_v22, 0.0 }
  0x25   :  { %45 = vadd.xlane.f32.xlu0 %v44_v23 }
  0x98   :  { %v46_v28 = vpop.xlane.xlu0 %45 }
  0x99   :  { %v47_v29 = vrot.slane %v46_v28, 4 }
  0x9b   :  { %v48_v30 = vadd.f32 %v47_v29, %v46_v28 }
  0x9d   :  { %v49_v32 = vrot.slane %v48_v30, 2 }
  0x9f   :  { %v50_v33 = vadd.f32 %v49_v32, %v48_v30 }
  0xa1   :  { %v51_v35 = vrot.slane %v50_v33, 1 }
  0xa3   :  { %v52_v36 = vadd.f32 %v51_v35, %v50_v33 }
  0xa5   :  { %80 = vpush %v52_v36 }
  0xa6   :  { %82 = vpush %v60_v37 }
  0xd6   :  { %s81_s18 = spop %80 }
  0xd7   :  { %s83_s19 = spop %82 }
  0xd8   :  { %s62_s20 = smul.f32 %s83_s19, %s81_s18 }
  0xda   :  { %64 = sst [smem:[#allocation3]] %s62_s20 }
  0xdb   :  { %73 = dma.smem_to_hbm %s105_s21, 16, %s71_s17, [#allocation4]  }
  0xdc   :  { %101 = dma.done.wait [#allocation4], 16  }
  0xdd   :  { %102 = vsyncadd [#allocation4], 4294967280 }
  0xde   :  { %78 = sfence }
  0xdf   :  { %79 = vsyncpa [#allocation4], 1 }

</bundles_post_ra>
